<compile_context>
chip_gen: v5e
topology: v5e:2x2
jax: 0.10.0
libtpu: 0.0.40
codegen_flags: <defaults>
</compile_context>

<pallas_src>
import functools

import jax
import jax.numpy as jnp
from jax.experimental import pallas as pl
from jax.experimental.pallas import tpu as pltpu


# ----------------------------- Pallas kernel --------------------------------
def attention_block_kernel(g_ref, x_ref, w_ref, ws_ref, bs_ref, out_ref, *, use_mxu):
    # g_ref: (b_blk, F_g, T), x_ref: (b_blk, F_l, T)   -- tokens on the lane dim
    # w_ref: (F_int, F_g + F_l + 1) = [W_g | W_x | b_g + b_x]   (BN folded)
    # ws_ref: (F_int, 1) folded sampler weight
    # bs_ref: (1,) f32 folded sampler bias, in SMEM
    b_blk, F_g, T = g_ref.shape
    F_l = x_ref.shape[1]
    F_int, KW = w_ref.shape            # KW = F_g + F_l + 1

    w = w_ref[...]                     # tiny resident block
    w_s = ws_ref[...]                  # (F_int, 1) f32
    b_s = bs_ref[0]                    # scalar f32 from SMEM

    if use_mxu:
        ones_row = jnp.ones((1, T), dtype=g_ref.dtype)           # hoisted
    else:
        # Tiny-channel path: pre-slice weight columns once (hoisted out of loop).
        w_cols = [w[:, c:c + 1].astype(jnp.float32) for c in range(KW)]
        bias_bcast = jnp.broadcast_to(w_cols[KW - 1], (F_int, T))

    for b in range(b_blk):             # static unroll; b_blk is small
        g = g_ref[b]                   # (F_g, T)
        x = x_ref[b]                   # (F_l, T)

        if use_mxu:
            # h = relu(W_cat @ [g; x; 1]) : one MXU dot, bias free via ones row.
            stacked = jnp.concatenate([g, x, ones_row], axis=0)  # on-chip copy only
            h = jnp.dot(w, stacked, preferred_element_type=jnp.float32)
        else:
            # (F_int, small)@(small, T) wastes the MXU -> unrolled VPU FMAs.
            h = bias_bcast
            for c in range(F_g):
                h = h + w_cols[c] * g[c:c + 1, :]
            for c in range(F_l):
                h = h + w_cols[F_g + c] * x[c:c + 1, :]
        h = jnp.maximum(h, 0.0)                                  # ReLU, f32

        # Sampler: sigmoid(BN(Conv1x1(h))) as a sublane (XLU) reduce + EUP
        # sigmoid instead of a width-1 MXU matmul; stays lane-dense.
        psi = jax.nn.sigmoid(jnp.sum(h * w_s, axis=0, keepdims=True) + b_s)  # (1, T)
        out_ref[b] = (x * psi.astype(x.dtype)).astype(out_ref.dtype)


# ------------------------------ wrapper --------------------------------------
def fold_bn(w, b, gamma, beta, mean, var, eps=1e-5):
    """Fold inference-mode BatchNorm into a 1x1 conv; w: (C_in, C_out), b: (C_out,)."""
    scale = gamma / jnp.sqrt(var + eps)
    return w * scale[None, :], (b - mean) * scale + beta


def attention_block(g, x, params, *, tile=2048, vmem_budget_bytes=12 << 20,
                    max_batch_block=8):
    """g: (B, F_g, H, W), x: (B, F_l, H, W) NCHW (like PyTorch). Returns (B, F_l, H, W)."""
    B, F_g, H, W = g.shape
    _, F_l, _, _ = x.shape
    HW = H * W
    dtype = x.dtype
    itemsize = dtype.itemsize

    # Fold BN into each 1x1 conv (tiny parameter-side setup).
    wg, bg = fold_bn(params["wg"], params["bg_conv"], params["g_gamma"],
                     params["g_beta"], params["g_mean"], params["g_var"])
    wx, bx = fold_bn(params["wx"], params["bx_conv"], params["x_gamma"],
                     params["x_beta"], params["x_mean"], params["x_var"])
    ws, bs = fold_bn(params["ws"], params["bs_conv"], params["s_gamma"],
                     params["s_beta"], params["s_mean"], params["s_var"])
    F_int = wg.shape[1]

    # Fused projection weight [W_g | W_x | b_g + b_x] -> (F_int, F_g + F_l + 1).
    w_cat = jnp.concatenate([wg.T, wx.T, (bg + bx)[:, None]], axis=1).astype(dtype)
    w_samp = ws.reshape(F_int, 1).astype(jnp.float32)            # (F_int, 1)
    b_samp = jnp.asarray(bs, jnp.float32).reshape(1)             # (1,) SMEM scalar

    # Lane-dense token tiling.  No padding / post-slice: ragged last tile is
    # handled by Pallas (partial store is masked; padded lanes never reused).
    hw_128 = ((HW + 127) // 128) * 128
    tile_eff = max(128, min((max(int(tile), 128) // 128) * 128, hw_128))

    def step_vmem_bytes(b_blk, t):
        io = 2 * b_blk * t * (F_g + 2 * F_l) * itemsize   # double-buffered g/x/out blocks
        scratch = b_blk * t * F_int * 4                   # f32 h intermediate
        return io + scratch

    # Shrink tile until a one-batch step fits the (generation-safe) VMEM budget.
    while tile_eff > 128 and step_vmem_bytes(1, tile_eff) > vmem_budget_bytes:
        tile_eff -= 128

    # Fatten small steps (small H*W) by blocking batch elements per grid step.
    b_blk = 1
    while (b_blk < B and b_blk < max_batch_block
           and (b_blk + 1) * tile_eff <= 8192
           and step_vmem_bytes(b_blk + 1, tile_eff) <= vmem_budget_bytes):
        b_blk += 1

    # For tiny channel counts skip the MXU; otherwise one fused dot.
    use_mxu = (F_g + F_l) > 16 or F_int > 32

    g_t = g.reshape(B, F_g, HW)   # NCHW -> (B, C, HW): free reshape, no HBM pass
    x_t = x.reshape(B, F_l, HW)

    grid = (pl.cdiv(B, b_blk), pl.cdiv(HW, tile_eff))
    tokens = B * HW
    cost = pl.CostEstimate(
        flops=int(2 * tokens * F_int * (F_g + F_l + 1)
                  + tokens * (3 * F_int + 2 * F_l + 4)),
        transcendentals=int(tokens),
        bytes_accessed=int(itemsize * tokens * (F_g + 2 * F_l)),
    )

    kernel = functools.partial(attention_block_kernel, use_mxu=use_mxu)

    out_t = pl.pallas_call(
        kernel,
        out_shape=jax.ShapeDtypeStruct((B, F_l, HW), dtype),
        grid_spec=pltpu.PrefetchScalarGridSpec(
            num_scalar_prefetch=0,
            grid=grid,
            in_specs=[
                pl.BlockSpec((b_blk, F_g, tile_eff), lambda b, i: (b, 0, i)),   # g tile
                pl.BlockSpec((b_blk, F_l, tile_eff), lambda b, i: (b, 0, i)),   # x tile
                pl.BlockSpec((F_int, F_g + F_l + 1), lambda b, i: (0, 0)),      # W_cat (resident)
                pl.BlockSpec((F_int, 1), lambda b, i: (0, 0)),                  # sampler weight
                pl.BlockSpec(memory_space=pltpu.MemorySpace.SMEM),              # sampler bias
            ],
            out_specs=pl.BlockSpec((b_blk, F_l, tile_eff), lambda b, i: (b, 0, i)),
        ),
        compiler_params=pltpu.CompilerParams(
            dimension_semantics=("parallel", "parallel")),
        cost_estimate=cost,
    )(g_t, x_t, w_cat, w_samp, b_samp)

    return out_t.reshape(B, F_l, H, W)


# ----------------------------- reference (pure JAX) ---------------------------
def attention_block_ref(g, x, params):
    wg, bg = fold_bn(params["wg"], params["bg_conv"], params["g_gamma"],
                     params["g_beta"], params["g_mean"], params["g_var"])
    wx, bx = fold_bn(params["wx"], params["bx_conv"], params["x_gamma"],
                     params["x_beta"], params["x_mean"], params["x_var"])
    ws, bs = fold_bn(params["ws"], params["bs_conv"], params["s_gamma"],
                     params["s_beta"], params["s_mean"], params["s_var"])
    g_h = jnp.transpose(g, (0, 2, 3, 1))
    x_h = jnp.transpose(x, (0, 2, 3, 1))
    h = jnp.maximum((g_h @ wg + bg) + (x_h @ wx + bx), 0.0)
    psi = jax.nn.sigmoid(h @ ws + bs)
    return jnp.transpose(x_h * psi, (0, 3, 1, 2))


def make_params(key, F_g, F_l, F_int):
    # Conv2d 1x1 weights stored as (C_in, C_out); BN in inference mode
    # (deterministic, nontrivial running stats).
    ks = jax.random.split(key, 16)

    def n(k, shape, s):
        return s * jax.random.normal(k, shape, jnp.float32)

    return {
        "wg": n(ks[0], (F_g, F_int), 0.3),
        "bg_conv": n(ks[1], (F_int,), 0.1),
        "g_gamma": 1.0 + n(ks[2], (F_int,), 0.1),
        "g_beta": n(ks[3], (F_int,), 0.05),
        "g_mean": n(ks[4], (F_int,), 0.02),
        "g_var": jnp.abs(1.0 + n(ks[5], (F_int,), 0.1)),

        "wx": n(ks[6], (F_l, F_int), 0.3),
        "bx_conv": n(ks[7], (F_int,), 0.1),
        "x_gamma": 1.0 + n(ks[8], (F_int,), 0.1),
        "x_beta": n(ks[9], (F_int,), 0.05),
        "x_mean": n(ks[10], (F_int,), 0.02),
        "x_var": jnp.abs(1.0 + n(ks[11], (F_int,), 0.1)),

        "ws": n(ks[12], (F_int, 1), 0.3),
        "bs_conv": n(ks[13], (1,), 0.1),
        "s_gamma": 1.0 + n(ks[14], (1,), 0.1),
        "s_beta": n(ks[15], (1,), 0.05),
        "s_mean": jnp.zeros((1,), jnp.float32),
        "s_var": jnp.ones((1,), jnp.float32),
    }


# ------------------------------- main -----------------------------------------
if __name__ == "__main__":
    key = jax.random.PRNGKey(0)
    k0, k1, k2, k3, k4, k5 = jax.random.split(key, 6)

    # Test 1: tiny-channel config (VPU projection path), batch-blocked step.
    B, F_g, F_l, F_int, H, W = 2, 4, 4, 8, 16, 16
    g = jax.random.normal(k0, (B, F_g, H, W), jnp.float32)
    x = jax.random.normal(k1, (B, F_l, H, W), jnp.float32)
    params = make_params(k2, F_g, F_l, F_int)
    out = jax.block_until_ready(attention_block(g, x, params))
    ref = attention_block_ref(g, x, params)
    assert out.shape == x.shape
    assert jnp.allclose(out, ref, atol=1e-5, rtol=1e-5), "mismatch (small-channel path)"

    # Test 2: wider channels (fused MXU path) and H*W not a multiple of 128,
    # exercising the ragged last-tile masked store (no wrapper pad / slice).
    B2, F_g2, F_l2, F_int2, H2, W2 = 2, 48, 32, 24, 12, 12
    g2 = jax.random.normal(k3, (B2, F_g2, H2, W2), jnp.float32)
    x2 = jax.random.normal(k4, (B2, F_l2, H2, W2), jnp.float32)
    params2 = make_params(k5, F_g2, F_l2, F_int2)
    out2 = jax.block_until_ready(attention_block(g2, x2, params2))
    ref2 = attention_block_ref(g2, x2, params2)
    assert out2.shape == x2.shape
    assert jnp.allclose(out2, ref2, atol=1e-4, rtol=1e-4), "mismatch (MXU path)"

    print("KERNEL_OK")
</pallas_src>

<mosaic_0001>
module attributes {stable_mosaic.version = 11 : i64} {
  func.func @attention_block_kernel(%arg0: i32, %arg1: i32, %arg2: memref<2x4x256xf32, #tpu.memory_space<vmem>>, %arg3: memref<2x4x256xf32, #tpu.memory_space<vmem>>, %arg4: memref<8x9xf32, #tpu.memory_space<vmem>>, %arg5: memref<8x1xf32, #tpu.memory_space<vmem>>, %arg6: memref<1xf32, #tpu.memory_space<smem>>, %arg7: memref<2x4x256xf32, #tpu.memory_space<vmem>>) attributes {dimension_semantics = [#tpu.dimension_semantics<parallel>, #tpu.dimension_semantics<parallel>], iteration_bounds = array<i64: 1, 1>, scalar_prefetch = 0 : i64, scratch_operands = 0 : i64, tpu.core_type = #tpu.core_type<tc>, window_params = [{transform_indices = @transform_0, window_bounds = array<i64: 2, 4, 256>}, {transform_indices = @transform_1, window_bounds = array<i64: 2, 4, 256>}, {pipeline_mode = #tpu.pipeline_mode<synchronous>, transform_indices = @transform_2, window_bounds = array<i64: 8, 9>}, {pipeline_mode = #tpu.pipeline_mode<synchronous>, transform_indices = @transform_3, window_bounds = array<i64: 8, 1>}, {transform_indices = @transform_4, window_bounds = array<i64: 1>}, {transform_indices = @transform_5, window_bounds = array<i64: 2, 4, 256>}]} {
    %c0 = arith.constant 0 : index
    %c0_0 = arith.constant 0 : index
    %0 = vector.load %arg4[%c0, %c0_0] : memref<8x9xf32, #tpu.memory_space<vmem>>, vector<8x9xf32>
    %c0_1 = arith.constant 0 : index
    %c0_2 = arith.constant 0 : index
    %1 = vector.load %arg5[%c0_1, %c0_2] : memref<8x1xf32, #tpu.memory_space<vmem>>, vector<8x1xf32>
    %c0_3 = arith.constant 0 : index
    %2 = memref.load %arg6[%c0_3] : memref<1xf32, #tpu.memory_space<smem>>
    %3 = vector.extract_strided_slice %0 {offsets = [0, 0], sizes = [8, 1], strides = [1, 1]} : vector<8x9xf32> to vector<8x1xf32>
    %4 = vector.extract_strided_slice %0 {offsets = [0, 1], sizes = [8, 1], strides = [1, 1]} : vector<8x9xf32> to vector<8x1xf32>
    %5 = vector.extract_strided_slice %0 {offsets = [0, 2], sizes = [8, 1], strides = [1, 1]} : vector<8x9xf32> to vector<8x1xf32>
    %6 = vector.extract_strided_slice %0 {offsets = [0, 3], sizes = [8, 1], strides = [1, 1]} : vector<8x9xf32> to vector<8x1xf32>
    %7 = vector.extract_strided_slice %0 {offsets = [0, 4], sizes = [8, 1], strides = [1, 1]} : vector<8x9xf32> to vector<8x1xf32>
    %8 = vector.extract_strided_slice %0 {offsets = [0, 5], sizes = [8, 1], strides = [1, 1]} : vector<8x9xf32> to vector<8x1xf32>
    %9 = vector.extract_strided_slice %0 {offsets = [0, 6], sizes = [8, 1], strides = [1, 1]} : vector<8x9xf32> to vector<8x1xf32>
    %10 = vector.extract_strided_slice %0 {offsets = [0, 7], sizes = [8, 1], strides = [1, 1]} : vector<8x9xf32> to vector<8x1xf32>
    %11 = vector.extract_strided_slice %0 {offsets = [0, 8], sizes = [8, 1], strides = [1, 1]} : vector<8x9xf32> to vector<8x1xf32>
    %12 = vector.shape_cast %11 : vector<8x1xf32> to vector<8x1xf32>
    %13 = vector.broadcast %12 : vector<8x1xf32> to vector<8x256xf32>
    %c0_4 = arith.constant 0 : index
    %c0_5 = arith.constant 0 : index
    %c0_6 = arith.constant 0 : index
    %14 = vector.load %arg2[%c0_4, %c0_5, %c0_6] : memref<2x4x256xf32, #tpu.memory_space<vmem>>, vector<1x4x256xf32>
    %15 = vector.shape_cast %14 : vector<1x4x256xf32> to vector<4x256xf32>
    %c0_7 = arith.constant 0 : index
    %c0_8 = arith.constant 0 : index
    %c0_9 = arith.constant 0 : index
    %16 = vector.load %arg3[%c0_7, %c0_8, %c0_9] : memref<2x4x256xf32, #tpu.memory_space<vmem>>, vector<1x4x256xf32>
    %17 = vector.shape_cast %16 : vector<1x4x256xf32> to vector<4x256xf32>
    %18 = vector.extract_strided_slice %15 {offsets = [0, 0], sizes = [1, 256], strides = [1, 1]} : vector<4x256xf32> to vector<1x256xf32>
    %19 = vector.broadcast %3 : vector<8x1xf32> to vector<8x256xf32>
    %20 = vector.broadcast %18 : vector<1x256xf32> to vector<8x256xf32>
    %21 = arith.mulf %19, %20 : vector<8x256xf32>
    %22 = arith.addf %13, %21 : vector<8x256xf32>
    %23 = vector.extract_strided_slice %15 {offsets = [1, 0], sizes = [1, 256], strides = [1, 1]} : vector<4x256xf32> to vector<1x256xf32>
    %24 = vector.broadcast %4 : vector<8x1xf32> to vector<8x256xf32>
    %25 = vector.broadcast %23 : vector<1x256xf32> to vector<8x256xf32>
    %26 = arith.mulf %24, %25 : vector<8x256xf32>
    %27 = arith.addf %22, %26 : vector<8x256xf32>
    %28 = vector.extract_strided_slice %15 {offsets = [2, 0], sizes = [1, 256], strides = [1, 1]} : vector<4x256xf32> to vector<1x256xf32>
    %29 = vector.broadcast %5 : vector<8x1xf32> to vector<8x256xf32>
    %30 = vector.broadcast %28 : vector<1x256xf32> to vector<8x256xf32>
    %31 = arith.mulf %29, %30 : vector<8x256xf32>
    %32 = arith.addf %27, %31 : vector<8x256xf32>
    %33 = vector.extract_strided_slice %15 {offsets = [3, 0], sizes = [1, 256], strides = [1, 1]} : vector<4x256xf32> to vector<1x256xf32>
    %34 = vector.broadcast %6 : vector<8x1xf32> to vector<8x256xf32>
    %35 = vector.broadcast %33 : vector<1x256xf32> to vector<8x256xf32>
    %36 = arith.mulf %34, %35 : vector<8x256xf32>
    %37 = arith.addf %32, %36 : vector<8x256xf32>
    %38 = vector.extract_strided_slice %17 {offsets = [0, 0], sizes = [1, 256], strides = [1, 1]} : vector<4x256xf32> to vector<1x256xf32>
    %39 = vector.broadcast %7 : vector<8x1xf32> to vector<8x256xf32>
    %40 = vector.broadcast %38 : vector<1x256xf32> to vector<8x256xf32>
    %41 = arith.mulf %39, %40 : vector<8x256xf32>
    %42 = arith.addf %37, %41 : vector<8x256xf32>
    %43 = vector.extract_strided_slice %17 {offsets = [1, 0], sizes = [1, 256], strides = [1, 1]} : vector<4x256xf32> to vector<1x256xf32>
    %44 = vector.broadcast %8 : vector<8x1xf32> to vector<8x256xf32>
    %45 = vector.broadcast %43 : vector<1x256xf32> to vector<8x256xf32>
    %46 = arith.mulf %44, %45 : vector<8x256xf32>
    %47 = arith.addf %42, %46 : vector<8x256xf32>
    %48 = vector.extract_strided_slice %17 {offsets = [2, 0], sizes = [1, 256], strides = [1, 1]} : vector<4x256xf32> to vector<1x256xf32>
    %49 = vector.broadcast %9 : vector<8x1xf32> to vector<8x256xf32>
    %50 = vector.broadcast %48 : vector<1x256xf32> to vector<8x256xf32>
    %51 = arith.mulf %49, %50 : vector<8x256xf32>
    %52 = arith.addf %47, %51 : vector<8x256xf32>
    %53 = vector.extract_strided_slice %17 {offsets = [3, 0], sizes = [1, 256], strides = [1, 1]} : vector<4x256xf32> to vector<1x256xf32>
    %54 = vector.broadcast %10 : vector<8x1xf32> to vector<8x256xf32>
    %55 = vector.broadcast %53 : vector<1x256xf32> to vector<8x256xf32>
    %56 = arith.mulf %54, %55 : vector<8x256xf32>
    %57 = arith.addf %52, %56 : vector<8x256xf32>
    %cst = arith.constant 0.000000e+00 : f32
    %58 = vector.broadcast %cst : f32 to vector<8x256xf32>
    %59 = arith.maximumf %57, %58 : vector<8x256xf32>
    %60 = vector.broadcast %1 : vector<8x1xf32> to vector<8x256xf32>
    %61 = arith.mulf %59, %60 : vector<8x256xf32>
    %cst_10 = arith.constant dense<0.000000e+00> : vector<256xf32>
    %62 = vector.multi_reduction <add>, %61, %cst_10 [0] : vector<8x256xf32> to vector<256xf32>
    %63 = vector.shape_cast %62 : vector<256xf32> to vector<1x256xf32>
    %64 = vector.broadcast %2 : f32 to vector<1x256xf32>
    %65 = arith.addf %63, %64 : vector<1x256xf32>
    %66 = arith.negf %65 : vector<1x256xf32>
    %67 = math.exp %66 : vector<1x256xf32>
    %cst_11 = arith.constant 1.000000e+00 : f32
    %68 = vector.broadcast %cst_11 : f32 to vector<1x256xf32>
    %69 = arith.addf %68, %67 : vector<1x256xf32>
    %70 = arith.divf %68, %69 : vector<1x256xf32>
    %71 = vector.broadcast %70 : vector<1x256xf32> to vector<4x256xf32>
    %72 = arith.mulf %17, %71 : vector<4x256xf32>
    %c0_12 = arith.constant 0 : index
    %c0_13 = arith.constant 0 : index
    %c0_14 = arith.constant 0 : index
    %73 = vector.load %arg7[%c0_12, %c0_13, %c0_14] : memref<2x4x256xf32, #tpu.memory_space<vmem>>, vector<1x4x256xf32>
    %74 = vector.shape_cast %73 : vector<1x4x256xf32> to vector<4x256xf32>
    %75 = vector.shape_cast %72 : vector<4x256xf32> to vector<1x4x256xf32>
    tpu.vector_store %arg7[%c0_12, %c0_13, %c0_14], %75 {strides = array<i32>} : memref<2x4x256xf32, #tpu.memory_space<vmem>>, vector<1x4x256xf32>,
    %c1 = arith.constant 1 : index
    %c0_15 = arith.constant 0 : index
    %c0_16 = arith.constant 0 : index
    %76 = vector.load %arg2[%c1, %c0_15, %c0_16] : memref<2x4x256xf32, #tpu.memory_space<vmem>>, vector<1x4x256xf32>
    %77 = vector.shape_cast %76 : vector<1x4x256xf32> to vector<4x256xf32>
    %c1_17 = arith.constant 1 : index
    %c0_18 = arith.constant 0 : index
    %c0_19 = arith.constant 0 : index
    %78 = vector.load %arg3[%c1_17, %c0_18, %c0_19] : memref<2x4x256xf32, #tpu.memory_space<vmem>>, vector<1x4x256xf32>
    %79 = vector.shape_cast %78 : vector<1x4x256xf32> to vector<4x256xf32>
    %80 = vector.extract_strided_slice %77 {offsets = [0, 0], sizes = [1, 256], strides = [1, 1]} : vector<4x256xf32> to vector<1x256xf32>
    %81 = vector.broadcast %3 : vector<8x1xf32> to vector<8x256xf32>
    %82 = vector.broadcast %80 : vector<1x256xf32> to vector<8x256xf32>
    %83 = arith.mulf %81, %82 : vector<8x256xf32>
    %84 = arith.addf %13, %83 : vector<8x256xf32>
    %85 = vector.extract_strided_slice %77 {offsets = [1, 0], sizes = [1, 256], strides = [1, 1]} : vector<4x256xf32> to vector<1x256xf32>
    %86 = vector.broadcast %4 : vector<8x1xf32> to vector<8x256xf32>
    %87 = vector.broadcast %85 : vector<1x256xf32> to vector<8x256xf32>
    %88 = arith.mulf %86, %87 : vector<8x256xf32>
    %89 = arith.addf %84, %88 : vector<8x256xf32>
    %90 = vector.extract_strided_slice %77 {offsets = [2, 0], sizes = [1, 256], strides = [1, 1]} : vector<4x256xf32> to vector<1x256xf32>
    %91 = vector.broadcast %5 : vector<8x1xf32> to vector<8x256xf32>
    %92 = vector.broadcast %90 : vector<1x256xf32> to vector<8x256xf32>
    %93 = arith.mulf %91, %92 : vector<8x256xf32>
    %94 = arith.addf %89, %93 : vector<8x256xf32>
    %95 = vector.extract_strided_slice %77 {offsets = [3, 0], sizes = [1, 256], strides = [1, 1]} : vector<4x256xf32> to vector<1x256xf32>
    %96 = vector.broadcast %6 : vector<8x1xf32> to vector<8x256xf32>
    %97 = vector.broadcast %95 : vector<1x256xf32> to vector<8x256xf32>
    %98 = arith.mulf %96, %97 : vector<8x256xf32>
    %99 = arith.addf %94, %98 : vector<8x256xf32>
    %100 = vector.extract_strided_slice %79 {offsets = [0, 0], sizes = [1, 256], strides = [1, 1]} : vector<4x256xf32> to vector<1x256xf32>
    %101 = vector.broadcast %7 : vector<8x1xf32> to vector<8x256xf32>
    %102 = vector.broadcast %100 : vector<1x256xf32> to vector<8x256xf32>
    %103 = arith.mulf %101, %102 : vector<8x256xf32>
    %104 = arith.addf %99, %103 : vector<8x256xf32>
    %105 = vector.extract_strided_slice %79 {offsets = [1, 0], sizes = [1, 256], strides = [1, 1]} : vector<4x256xf32> to vector<1x256xf32>
    %106 = vector.broadcast %8 : vector<8x1xf32> to vector<8x256xf32>
    %107 = vector.broadcast %105 : vector<1x256xf32> to vector<8x256xf32>
    %108 = arith.mulf %106, %107 : vector<8x256xf32>
    %109 = arith.addf %104, %108 : vector<8x256xf32>
    %110 = vector.extract_strided_slice %79 {offsets = [2, 0], sizes = [1, 256], strides = [1, 1]} : vector<4x256xf32> to vector<1x256xf32>
    %111 = vector.broadcast %9 : vector<8x1xf32> to vector<8x256xf32>
    %112 = vector.broadcast %110 : vector<1x256xf32> to vector<8x256xf32>
    %113 = arith.mulf %111, %112 : vector<8x256xf32>
    %114 = arith.addf %109, %113 : vector<8x256xf32>
    %115 = vector.extract_strided_slice %79 {offsets = [3, 0], sizes = [1, 256], strides = [1, 1]} : vector<4x256xf32> to vector<1x256xf32>
    %116 = vector.broadcast %10 : vector<8x1xf32> to vector<8x256xf32>
    %117 = vector.broadcast %115 : vector<1x256xf32> to vector<8x256xf32>
    %118 = arith.mulf %116, %117 : vector<8x256xf32>
    %119 = arith.addf %114, %118 : vector<8x256xf32>
    %cst_20 = arith.constant 0.000000e+00 : f32
    %120 = vector.broadcast %cst_20 : f32 to vector<8x256xf32>
    %121 = arith.maximumf %119, %120 : vector<8x256xf32>
    %122 = vector.broadcast %1 : vector<8x1xf32> to vector<8x256xf32>
    %123 = arith.mulf %121, %122 : vector<8x256xf32>
    %cst_21 = arith.constant dense<0.000000e+00> : vector<256xf32>
    %124 = vector.multi_reduction <add>, %123, %cst_21 [0] : vector<8x256xf32> to vector<256xf32>
    %125 = vector.shape_cast %124 : vector<256xf32> to vector<1x256xf32>
    %126 = vector.broadcast %2 : f32 to vector<1x256xf32>
    %127 = arith.addf %125, %126 : vector<1x256xf32>
    %128 = arith.negf %127 : vector<1x256xf32>
    %129 = math.exp %128 : vector<1x256xf32>
    %cst_22 = arith.constant 1.000000e+00 : f32
    %130 = vector.broadcast %cst_22 : f32 to vector<1x256xf32>
    %131 = arith.addf %130, %129 : vector<1x256xf32>
    %132 = arith.divf %130, %131 : vector<1x256xf32>
    %133 = vector.broadcast %132 : vector<1x256xf32> to vector<4x256xf32>
    %134 = arith.mulf %79, %133 : vector<4x256xf32>
    %c1_23 = arith.constant 1 : index
    %c0_24 = arith.constant 0 : index
    %c0_25 = arith.constant 0 : index
    %135 = vector.load %arg7[%c1_23, %c0_24, %c0_25] : memref<2x4x256xf32, #tpu.memory_space<vmem>>, vector<1x4x256xf32>
    %136 = vector.shape_cast %135 : vector<1x4x256xf32> to vector<4x256xf32>
    %137 = vector.shape_cast %134 : vector<4x256xf32> to vector<1x4x256xf32>
    tpu.vector_store %arg7[%c1_23, %c0_24, %c0_25], %137 {strides = array<i32>} : memref<2x4x256xf32, #tpu.memory_space<vmem>>, vector<1x4x256xf32>,
    return
  }
  func.func @transform_0(%arg0: i32, %arg1: i32) -> (i32, i32, i32) {
    %c0_i32 = arith.constant 0 : i32
    %c0_i32_0 = arith.constant 0 : i32
    return %arg0, %c0_i32, %arg1 : i32, i32, i32
  }
  func.func @transform_1(%arg0: i32, %arg1: i32) -> (i32, i32, i32) {
    %c0_i32 = arith.constant 0 : i32
    %c0_i32_0 = arith.constant 0 : i32
    return %arg0, %c0_i32, %arg1 : i32, i32, i32
  }
  func.func @transform_2(%arg0: i32, %arg1: i32) -> (i32, i32) {
    %c0_i32 = arith.constant 0 : i32
    %c0_i32_0 = arith.constant 0 : i32
    %c0_i32_1 = arith.constant 0 : i32
    return %c0_i32, %c0_i32_0 : i32, i32
  }
  func.func @transform_3(%arg0: i32, %arg1: i32) -> (i32, i32) {
    %c0_i32 = arith.constant 0 : i32
    %c0_i32_0 = arith.constant 0 : i32
    %c0_i32_1 = arith.constant 0 : i32
    return %c0_i32, %c0_i32_0 : i32, i32
  }
  func.func @transform_4(%arg0: i32, %arg1: i32) -> i32 {
    %c0_i32 = arith.constant 0 : i32
    %c0_i32_0 = arith.constant 0 : i32
    return %c0_i32 : i32
  }
  func.func @transform_5(%arg0: i32, %arg1: i32) -> (i32, i32, i32) {
    %c0_i32 = arith.constant 0 : i32
    %c0_i32_0 = arith.constant 0 : i32
    return %arg0, %c0_i32, %arg1 : i32, i32, i32
  }
}

</mosaic_0001>

<bundles_post_ra>
// kernel: tpu_custom_call.1
= control target key start
LH: loop header
LB: loop body
LE: loop exit
PB: predicated region body
PF: predicated region fallthrough
CT: control target
= control target key end

     0   :  { %11 = vsyncpa [#allocation4], 0  ;;  %s684_s0 = inlined_call_operand.hbm [shape: f32[2,4,256], index: 0, kind: input, shape index: {}]   ;;  %s685_s1 = inlined_call_operand.hbm [shape: f32[2,4,256], index: 1, kind: input, shape index: {}]   ;;  %s686_s2 = inlined_call_operand.vmem [shape: f32[8,9], index: 2, kind: input, shape index: {}]   ;;  %s687_s3 = inlined_call_operand.vmem [shape: f32[8,1], index: 3, kind: input, shape index: {}]   ;;  %s688_s4 = inlined_call_operand.<no memory space> [shape: f32[1], index: 4, kind: input, shape index: {}]   ;;  %s689_s5 = inlined_call_operand.hbm [shape: f32[2,4,256], index: 5, kind: output, shape index: {}]  }
   0x1   :  { %12 = vsyncpa [#allocation7], 0 }
   0x2   :  { %13 = vsyncpa [#allocation5], 0  ;;  %s18_s20 = sshll.u32 %s684_s0, 4  ;;  %s541_s21 = smov [#allocation3]   ;;  %s19_s20 = int_to_ptr.hbm [resolvable:$true] %s18_s20 }
   0x3   :  { %s20_s22 = sshll.u32 %s541_s21, 4  ;;  %s31_s25 = sshll.u32 %s685_s1, 4  ;;  %s21_s22 = int_to_ptr.vmem [resolvable:$true] %s20_s22  ;;  %s32_s25 = int_to_ptr.hbm [resolvable:$true] %s31_s25 }
   0x4   :  { %s542_s26 = smov 128   ;;  %s543_s27 = smov 8  }
   0x5   :  { %26 = dma.hbm_to_vmem [thread:$0]  %s19_s20, 256, %s21_s22, [#allocation4], %s542_s26, %s542_s26, %s543_s27  }
   0x6   :  { %s544_s28 = smov [#allocation6]  }
   0x7   :  { %s33_s29 = sshll.u32 %s544_s28, 4  ;;  %s34_s29 = int_to_ptr.vmem [resolvable:$true] %s33_s29 }
   0x8   :  { %39 = dma.hbm_to_vmem [thread:$0]  %s32_s25, 256, %s34_s29, [#allocation7], %s542_s26, %s542_s26, %s543_s27  }
   0x9   :  { %535 = dma.done.wait [#allocation4], 256  }
   0xa   :  { %536 = vsyncadd [#allocation4], 4294967040 }
   0xb   :  { %537 = dma.done.wait [#allocation7], 256  }
   0xc   :  { %538 = vsyncadd [#allocation7], 4294967040  ;;  %v545_v0 = vmov 1   ;;  %v546_v1 = vmov 0   ;;  %v547_v2 = vmov 3   ;;  %v54_v3 = vld [vmem:[%s686_s2] sm:$0xff] }
   0xd   :  { %438 = vset.pattern.permute.xlu1 %v545_v0  ;;  %436 = vset.pattern.permute.xlu0 %v546_v1  ;;  %v548_v4 = vmov 2   ;;  %v549_v5 = vmov 8   ;;  %v550_v6 = vmov 4   ;;  %v551_v7 = vmov 5   ;;  %v55_v10 = vld [vmem:[%s687_s3] sm:$0xff]  ;;  %v249_v12 = vld [vmem:[#allocation3 + $0x8] sm:$0xff] }
   0xe   :  { %440 = vset.pattern.permute.xlu2 %v547_v2  ;;  %80 = vperm.xlu1 %438, %v54_v3   ;;  %v552_v8 = vmov 7   ;;  %v553_v9 = vmov 6   ;;  %v62_v11 = vld [vmem:[#allocation3] sm:$0xff]  ;;  %v263_v15 = vperm.slane %v249_v12, 1  ;;  %v264_v16 = vperm.slane %v249_v12, 5  ;;  %v611_v30 = vld [vmem:[#allocation6] sm:$0xff] }
   0xf   :  { %65 = vperm.xlu0 %436, %v54_v3   ;;  %108 = vperm.xlu2 %440, %v54_v3   ;;  %v83_v13 = vperm.slane %v62_v11, 1  ;;  %v84_v14 = vperm.slane %v62_v11, 5  ;;  %v69_v17 = vperm.slane %v62_v11, 0  ;;  %v70_v18 = vperm.slane %v62_v11, 4  ;;  %v613_v31 = vld [vmem:[#allocation6 + $0x8] sm:$0xff]  ;;  %s404_s10 = sshll.u32 %s689_s5, 4  ;;  %s405_s10 = int_to_ptr.hbm [resolvable:$true] %s404_s10 }
  0x10   :  { %v253_v19 = vperm.slane %v249_v12, 0  ;;  %v254_v20 = vperm.slane %v249_v12, 4  ;;  %v607_v24 = vperm.slane %v263_v15, 1  ;;  %v609_v25 = vperm.slane %v264_v16, 1 }
  0x11   :  { %v603_v22 = vperm.slane %v83_v13, 1  ;;  %v605_v23 = vperm.slane %v84_v14, 1  ;;  %v111_v26 = vperm.slane %v62_v11, 3  ;;  %v112_v27 = vperm.slane %v62_v11, 7 }
  0x12   :  { %v283_v28 = vperm.slane %v249_v12, 3  ;;  %v284_v29 = vperm.slane %v249_v12, 7  ;;  %v73_v32 = vperm.slane %v69_v17, 0  ;;  %v74_v33 = vperm.slane %v70_v18, 0 }
  0x13   :  { %v257_v34 = vperm.slane %v253_v19, 0  ;;  %v258_v35 = vperm.slane %v254_v20, 0  ;;  %v97_v36 = vperm.slane %v62_v11, 2  ;;  %v98_v37 = vperm.slane %v62_v11, 6 }
  0x14   :  { %v273_v38 = vperm.slane %v249_v12, 2  ;;  %v274_v39 = vperm.slane %v249_v12, 6  ;;  %v126_v40 = vperm.slane %v611_v30, 0  ;;  %v127_v41 = vperm.slane %v611_v30, 4 }
  0x15   :  { %v294_v42 = vperm.slane %v613_v31, 0  ;;  %v295_v43 = vperm.slane %v613_v31, 4  ;;  %v115_v46 = vperm.slane %v111_v26, 3  ;;  %v116_v47 = vperm.slane %v112_v27, 3 }
  0x16   :  { %439 = vset.pattern.permute.xlu1 %v548_v4  ;;  %v287_v48 = vperm.slane %v283_v28, 3  ;;  %v288_v49 = vperm.slane %v284_v29, 3  ;;  %v140_v50 = vperm.slane %v611_v30, 1  ;;  %v141_v51 = vperm.slane %v611_v30, 5 }
  0x17   :  { %437 = vset.pattern.permute.xlu0 %v549_v5  ;;  %94 = vperm.xlu1 %439, %v54_v3   ;;  %v304_v52 = vperm.slane %v613_v31, 1  ;;  %v305_v53 = vperm.slane %v613_v31, 5  ;;  %v101_v54 = vperm.slane %v97_v36, 2  ;;  %v102_v55 = vperm.slane %v98_v37, 2 }
  0x18   :  { %59 = vperm.xlu0 %437, %v54_v3   ;;  %441 = vset.pattern.permute.xlu2 %v550_v6  ;;  %v277_v56 = vperm.slane %v273_v38, 2  ;;  %v278_v57 = vperm.slane %v274_v39, 2  ;;  %v130_v58 = vperm.slane %v126_v40, 0  ;;  %v131_v59 = vperm.slane %v127_v41, 0 }
  0x19   :  { %122 = vperm.xlu2 %441, %v54_v3   ;;  %v298_v60 = vperm.slane %v294_v42, 0  ;;  %v299_v61 = vperm.slane %v295_v43, 0  ;;  %v625_v4 = vperm.slane %v141_v51, 1  ;;  %v627_v5 = vperm.slane %v304_v52, 1 }
  0x1a   :  { %v629_v6 = vperm.slane %v305_v53, 1  ;;  %v168_v15 = vperm.slane %v611_v30, 3  ;;  %v169_v16 = vperm.slane %v611_v30, 7  ;;  %v324_v17 = vperm.slane %v613_v31, 3 }
  0x1b   :  { %v325_v18 = vperm.slane %v613_v31, 7  ;;  %vm243_vm2 = vcmask 1043456  }
  0x1c   :  { %v172_v52 = vperm.slane %v168_v15, 3  ;;  %v173_v53 = vperm.slane %v169_v16, 3 }
  0x1f   :  { %442 = vset.pattern.permute.xlu1 %v551_v7  ;;  %v154_v7 = vperm.slane %v611_v30, 2 }
  0x20   :  { %444 = vset.pattern.permute.xlu0 %v552_v8  ;;  %137 = vperm.xlu1 %442, %v54_v3   ;;  %v155_v8 = vperm.slane %v611_v30, 6 }
  0x21   :  { %165 = vperm.xlu0 %444, %v54_v3   ;;  %443 = vset.pattern.permute.xlu2 %v553_v9  ;;  %v314_v9 = vperm.slane %v613_v31, 2 }
  0x22   :  { %151 = vperm.xlu2 %443, %v54_v3   ;;  %v623_v3 = vperm.slane %v140_v50, 1 }
  0x28   :  { %445 = vset.pattern.permute.xlu1 %v546_v1 }
  0x29   :  { %446 = vset.pattern.permute.xlu0 %v546_v1  ;;  %182 = vperm.xlu1 %445, %v55_v10   ;;  %v315_v10 = vperm.slane %v613_v31, 6 }
  0x69   :  { %v109_v21 = vpop.permute.xlu2 %108 }
  0x6a   :  { %v117_v62 = vmul.f32 %v115_v46, %v109_v21  ;;  %v118_v63 = vmul.f32 %v116_v47, %v109_v21  ;;  %v289_v0 = vmul.f32 %v287_v48, %v109_v21  ;;  %v290_v1 = vmul.f32 %v288_v49, %v109_v21 }
  0x6b   :  { %v158_v48 = vperm.slane %v154_v7, 2  ;;  %v318_v49 = vperm.slane %v314_v9, 2 }
  0x73   :  { %v123_v2 = vpop.permute.xlu2 %122 }
  0x74   :  { %v132_v11 = vmul.f32 %v130_v58, %v123_v2  ;;  %v133_v12 = vmul.f32 %v131_v59, %v123_v2  ;;  %v300_v13 = vmul.f32 %v298_v60, %v123_v2  ;;  %v301_v14 = vmul.f32 %v299_v61, %v123_v2 }
  0x75   :  { %v328_v58 = vperm.slane %v324_v17, 3 }
  0x80   :  { %v81_v44 = vpop.permute.xlu1 %80 }
  0x81   :  { %v66_v45 = vpop.permute.xlu0 %65  ;;  %v89_v29 = vmul.f32 %v603_v22, %v81_v44  ;;  %v90_v36 = vmul.f32 %v605_v23, %v81_v44  ;;  %v269_v37 = vmul.f32 %v607_v24, %v81_v44  ;;  %v270_v38 = vmul.f32 %v609_v25, %v81_v44  ;;  %v152_v44 = vpop.permute.xlu2 %151 }
  0x82   :  { %v75_v19 = vmul.f32 %v73_v32, %v66_v45  ;;  %v76_v20 = vmul.f32 %v74_v33, %v66_v45  ;;  %v259_v21 = vmul.f32 %v257_v34, %v66_v45  ;;  %v260_v26 = vmul.f32 %v258_v35, %v66_v45 }
  0x83   :  { %v159_v22 = vperm.slane %v155_v8, 2  ;;  %v319_v23 = vperm.slane %v315_v10, 2  ;;  %v160_v61 = vmul.f32 %v158_v48, %v152_v44  ;;  %v320_v7 = vmul.f32 %v318_v49, %v152_v44 }
  0x85   :  { %v161_v2 = vmul.f32 %v159_v22, %v152_v44  ;;  %v321_v8 = vmul.f32 %v319_v23, %v152_v44 }
  0x89   :  { %v95_v27 = vpop.permute.xlu1 %94 }
  0x8a   :  { %v60_v28 = vpop.permute.xlu0 %59  ;;  %v103_v43 = vmul.f32 %v101_v54, %v95_v27  ;;  %v104_v46 = vmul.f32 %v102_v55, %v95_v27  ;;  %v279_v32 = vmul.f32 %v277_v56, %v95_v27  ;;  %v280_v33 = vmul.f32 %v278_v57, %v95_v27 }
  0x8b   :  { %v77_v39 = vadd.f32 %v75_v19, %v60_v28  ;;  %v78_v40 = vadd.f32 %v76_v20, %v60_v28  ;;  %v261_v41 = vadd.f32 %v259_v21, %v60_v28  ;;  %v262_v42 = vadd.f32 %v260_v26, %v60_v28 }
  0x8c   :  { %v329_v54 = vperm.slane %v325_v18, 3 }
  0x8d   :  { %v91_v34 = vadd.f32 %v89_v29, %v77_v39  ;;  %v92_v35 = vadd.f32 %v90_v36, %v78_v40  ;;  %v271_v45 = vadd.f32 %v269_v37, %v261_v41  ;;  %v272_v47 = vadd.f32 %v270_v38, %v262_v42 }
  0x8f   :  { %v105_v50 = vadd.f32 %v103_v43, %v91_v34  ;;  %v106_v24 = vadd.f32 %v104_v46, %v92_v35  ;;  %v281_v51 = vadd.f32 %v279_v32, %v271_v45  ;;  %v282_v25 = vadd.f32 %v280_v33, %v272_v47 }
  0x91   :  { %v119_v55 = vadd.f32 %v117_v62, %v105_v50  ;;  %v120_v56 = vadd.f32 %v118_v63, %v106_v24  ;;  %v291_v57 = vadd.f32 %v289_v0, %v281_v51  ;;  %v292_v59 = vadd.f32 %v290_v1, %v282_v25 }
  0x92   :  { %v138_v60 = vpop.permute.xlu1 %137 }
  0x93   :  { %v166_v9 = vpop.permute.xlu0 %165  ;;  %v134_v10 = vadd.f32 %v132_v11, %v119_v55  ;;  %v135_v19 = vadd.f32 %v133_v12, %v120_v56  ;;  %v302_v20 = vadd.f32 %v300_v13, %v291_v57  ;;  %v303_v21 = vadd.f32 %v301_v14, %v292_v59 }
  0x94   :  { %v146_v26 = vmul.f32 %v623_v3, %v138_v60  ;;  %v147_v15 = vmul.f32 %v625_v4, %v138_v60  ;;  %v310_v16 = vmul.f32 %v627_v5, %v138_v60  ;;  %v311_v62 = vmul.f32 %v629_v6, %v138_v60 }
  0x95   :  { %v174_v63 = vmul.f32 %v172_v52, %v166_v9  ;;  %v175_v0 = vmul.f32 %v173_v53, %v166_v9  ;;  %v330_v1 = vmul.f32 %v328_v58, %v166_v9  ;;  %v331_v17 = vmul.f32 %v329_v54, %v166_v9 }
  0x96   :  { %v148_v18 = vadd.f32 %v146_v26, %v134_v10  ;;  %v149_v27 = vadd.f32 %v147_v15, %v135_v19  ;;  %v312_v28 = vadd.f32 %v310_v16, %v302_v20  ;;  %v313_v29 = vadd.f32 %v311_v62, %v303_v21 }
  0x97   :  { %v199_v56 = vstv %s688_s4  ;;  %s554_s4 = smov [#allocation8]  }
  0x98   :  { %v162_v11 = vadd.f32 %v160_v61, %v148_v18  ;;  %v163_v12 = vadd.f32 %v161_v2, %v149_v27  ;;  %v322_v13 = vadd.f32 %v320_v7, %v312_v28  ;;  %v323_v14 = vadd.f32 %v321_v8, %v313_v29  ;;  %s402_s7 = sshll.u32 %s554_s4, 4  ;;  %s403_s7 = int_to_ptr.vmem [resolvable:$true] %s402_s7 }
  0x9a   :  { %v176_v36 = vadd.f32 %v174_v63, %v162_v11  ;;  %v177_v3 = vadd.f32 %v175_v0, %v163_v12  ;;  %v332_v37 = vadd.f32 %v330_v1, %v322_v13  ;;  %v333_v4 = vadd.f32 %v331_v17, %v323_v14 }
  0x9b   :  { %v183_v38 = vpop.permute.xlu1 %182 }
  0x9c   :  { %v178_v5 = vmax.f32 %v176_v36, 0.0  ;;  %v179_v39 = vmax.f32 %v177_v3, 0.0  ;;  %v334_v6 = vmax.f32 %v332_v37, 0.0  ;;  %v335_v40 = vmax.f32 %v333_v4, 0.0 }
  0x9e   :  { %v185_v41 = vmul.f32 %v183_v38, %v178_v5  ;;  %v186_v42 = vmul.f32 %v183_v38, %v179_v39  ;;  %v336_v43 = vmul.f32 %v334_v6, %v183_v38  ;;  %v337_v46 = vmul.f32 %v335_v40, %v183_v38 }
  0xa0   :  { %v187_v32 = vrot.slane %v185_v41, 4  ;;  %v193_v33 = vrot.slane %v186_v42, 4  ;;  %v338_v34 = vrot.slane %v336_v43, 4  ;;  %v344_v35 = vrot.slane %v337_v46, 4 }
  0xa2   :  { %v188_v45 = vadd.f32 %v187_v32, %v185_v41  ;;  %v194_v47 = vadd.f32 %v193_v33, %v186_v42  ;;  %v339_v48 = vadd.f32 %v338_v34, %v336_v43  ;;  %v345_v22 = vadd.f32 %v344_v35, %v337_v46 }
  0xa4   :  { %v189_v49 = vrot.slane %v188_v45, 2  ;;  %v195_v23 = vrot.slane %v194_v47, 2  ;;  %v340_v50 = vrot.slane %v339_v48, 2  ;;  %v346_v24 = vrot.slane %v345_v22, 2 }
  0xa6   :  { %v190_v51 = vadd.f32 %v189_v49, %v188_v45  ;;  %v196_v25 = vadd.f32 %v195_v23, %v194_v47  ;;  %v341_v44 = vadd.f32 %v340_v50, %v339_v48  ;;  %v347_v52 = vadd.f32 %v346_v24, %v345_v22 }
  0xa8   :  { %v191_v53 = vrot.slane %v190_v51, 1  ;;  %v197_v58 = vrot.slane %v196_v25, 1  ;;  %v342_v54 = vrot.slane %v341_v44, 1  ;;  %v348_v55 = vrot.slane %v347_v52, 1 }
  0xaa   :  { %v192_v57 = vadd.f32 %v191_v53, %v190_v51  ;;  %v198_v59 = vadd.f32 %v197_v58, %v196_v25  ;;  %v343_v60 = vadd.f32 %v342_v54, %v341_v44  ;;  %v349_v61 = vadd.f32 %v348_v55, %v347_v52 }
  0xac   :  { %v200_v2 = vadd.f32 %v199_v56, %v192_v57  ;;  %v201_v7 = vadd.f32 %v199_v56, %v198_v59  ;;  %v350_v8 = vadd.f32 %v343_v60, %v199_v56  ;;  %v351_v9 = vadd.f32 %v349_v61, %v199_v56 }
  0xae   :  { %v418_v10 = vmul.f32 -1.442695, %v200_v2  ;;  %v419_v19 = vmul.f32 -1.442695, %v201_v7  ;;  %v420_v20 = vmul.f32 -1.442695, %v350_v8 }
  0xaf   :  { %v421_v21 = vmul.f32 -1.442695, %v351_v9 }
  0xb0   :  { %447 = vpow2.f32 %v418_v10 }
  0xb1   :  { %449 = vpow2.f32 %v419_v19 }
  0xb2   :  { %451 = vpow2.f32 %v420_v20 }
  0xb3   :  { %453 = vpow2.f32 %v421_v21 }
  0xb6   :  { %v448_v26 = vpop.eup %447 }
  0xb7   :  { %v450_v15 = vpop.eup %449  ;;  %v208_v16 = vadd.f32 1.0, %v448_v26 }
  0xb8   :  { %v452_v62 = vpop.eup %451  ;;  %v209_v63 = vadd.f32 1.0, %v450_v15 }
  0xb9   :  { %v454_v0 = vpop.eup %453  ;;  %455 = vrcp.f32 %v208_v16  ;;  %v650_v1 = vadd.f32 1.0, %v452_v62  ;;  %vm215_vm0 = vweird.f32 %v208_v16  ;;  %v219_v11 = vand.u32 2147483647, %v208_v16 }
  0xba   :  { %457 = vrcp.f32 %v209_v63  ;;  %v359_v17 = vadd.f32 1.0, %v454_v0  ;;  %v221_v36 = vand.u32 2147483648, %v208_v16  ;;  %vm230_vm1 = vweird.f32 %v209_v63 }
  0xbb   :  { %459 = vrcp.f32 %v650_v1  ;;  %v234_v4 = vand.u32 2147483647, %v209_v63  ;;  %v236_v38 = vand.u32 2147483648, %v209_v63  ;;  %vm365_vm4 = vweird.f32 %v650_v1 }
  0xbc   :  { %461 = vrcp.f32 %v359_v17  ;;  %v369_v41 = vand.u32 2147483647, %v650_v1  ;;  %v386_v32 = vand.u32 2147483648, %v359_v17  ;;  %v384_v45 = vand.u32 2147483647, %v359_v17 }
  0xbd   :  { %vm235_vm10 = vcmp.eq.f32.partialorder %v234_v4, 8.507059e+37  ;;  %v237_v47 = vor.u32 1.1754944e-38, %v236_v38  ;;  %v371_v22 = vand.u32 2147483648, %v650_v1  ;;  %vm380_vm12 = vweird.f32 %v359_v17 }
  0xbe   :  { %vm220_vm13 = vcmp.eq.f32.partialorder %v219_v11, 8.507059e+37  ;;  %v222_v51 = vor.u32 1.1754944e-38, %v221_v36  ;;  %v387_v44 = vor.u32 1.1754944e-38, %v386_v32  ;;  %vm385_vm15 = vcmp.eq.f32.partialorder %v384_v45, 8.507059e+37 }
  0xbf   :  { %v456_v18 = vpop.eup %455  ;;  %v372_v55 = vor.u32 1.1754944e-38, %v371_v22 }
  0xc0   :  { %v458_v27 = vpop.eup %457  ;;  %v211_v28 = vmul.f32 %v456_v18, %v208_v16  ;;  %vm216_vm3 = vweird.f32 %v456_v18 }
  0xc1   :  { %v460_v29 = vpop.eup %459  ;;  %v226_v12 = vmul.f32 %v458_v27, %v209_v63  ;;  %vm231_vm5 = vweird.f32 %v458_v27  ;;  %vm657_vm7 = vmor %vm215_vm0, %vm216_vm3  ;;  %vm370_vm0 = vcmp.eq.f32.partialorder %v369_v41, 8.507059e+37 }
  0xc2   :  { %v462_v13 = vpop.eup %461  ;;  %v212_v14 = vsub.f32 1.0, %v211_v28  ;;  %v361_v3 = vmul.f32 %v460_v29, %v650_v1  ;;  %vm366_vm6 = vweird.f32 %v460_v29  ;;  %vm232_vm9 = vmor %vm230_vm1, %vm231_vm5 }
  0xc3   :  { %v227_v37 = vsub.f32 1.0, %v226_v12  ;;  %v376_v5 = vmul.f32 %v462_v13, %v359_v17  ;;  %vm381_vm8 = vweird.f32 %v462_v13  ;;  %vm667_vm11 = vmor %vm365_vm4, %vm366_vm6 }
  0xc4   :  { %v213_v39 = vmul.f32 %v456_v18, %v212_v14  ;;  %v362_v6 = vsub.f32 1.0, %v361_v3  ;;  %vm382_vm14 = vmor %vm380_vm12, %vm381_vm8 }
  0xc5   :  { %v228_v40 = vmul.f32 %v458_v27, %v227_v37  ;;  %v377_v42 = vsub.f32 1.0, %v376_v5 }
  0xc6   :  { %v214_v43 = vadd.f32 %v456_v18, %v213_v39  ;;  %v363_v46 = vmul.f32 %v460_v29, %v362_v6 }
  0xc7   :  { %v229_v34 = vadd.f32 %v458_v27, %v228_v40  ;;  %v378_v35 = vmul.f32 %v462_v13, %v377_v42 }
  0xc8   :  { %v364_v48 = vadd.f32 %v460_v29, %v363_v46  ;;  %v218_v49 = vsel %vm657_vm7, %v456_v18, %v214_v43 }
  0xc9   :  { %v233_v23 = vsel %vm232_vm9, %v458_v27, %v229_v34  ;;  %v379_v24 = vadd.f32 %v462_v13, %v378_v35  ;;  %v223_v54 = vsel %vm220_vm13, %v222_v51, %v218_v49 }
  0xca   :  { %v238_v25 = vsel %vm235_vm10, %v237_v47, %v233_v23  ;;  %v368_v53 = vsel %vm667_vm11, %v460_v29, %v364_v48 }
  0xcb   :  { %v242_v52 = vrot.slane %v238_v25, 4  ;;  %v383_v58 = vsel %vm382_vm14, %v462_v13, %v379_v24  ;;  %v373_v61 = vsel %vm370_vm0, %v372_v55, %v368_v53 }
  0xcc   :  { %v388_v56 = vsel %vm385_vm15, %v387_v44, %v383_v58 }
  0xcd   :  { %v244_v57 = vsel %vm243_vm2, %v223_v54, %v242_v52  ;;  %v392_v59 = vrot.slane %v388_v56, 4 }
  0xce   :  { %v246_v60 = vmul.f32 %v244_v57, %v611_v30 }
  0xcf   :  { %v393_v2 = vsel %vm243_vm2, %v373_v61, %v392_v59 }
  0xd0   :  { %247 = vst [vmem:[#allocation8] sm:$0xff] %v246_v60  ;;  %v395_v7 = vmul.f32 %v393_v2, %v613_v31 }
  0xd2   :  { %397 = vst [vmem:[#allocation8 + $0x8] sm:$0xff] %v395_v7 }
  0xd3   :  { %410 = dma.vmem_to_hbm [thread:$0]  %s403_s7, 256, %s405_s10, [#allocation5], %s542_s26, %s542_s26, %s543_s27  }
  0xd4   :  { %539 = dma.done.wait [#allocation5], 256  }
  0xd5   :  { %540 = vsyncadd [#allocation5], 4294967040 }
  0xd6   :  { %415 = vsyncpa [#allocation4], 1 }
  0xd7   :  { %416 = vsyncpa [#allocation7], 1 }
  0xd8   :  { %417 = vsyncpa [#allocation5], 1 }

</bundles_post_ra>
